<compile_context>
chip_gen: v5e
topology: v5e:2x2
jax: 0.10.0
libtpu: 0.0.40
codegen_flags: <defaults>
</compile_context>

<pallas_src>
from functools import partial

import jax
import jax.numpy as jnp
from jax.experimental import pallas as pl
from jax.experimental.pallas import tpu as pltpu


def _round_up(x, m):
    return ((x + m - 1) // m) * m


def _pick_tb(b, n, target_rows=2048):
    """Samples per batch block: largest divisor of B with TB*N ~<= target_rows."""
    max_tb = max(1, target_rows // max(n, 1))
    best = 1
    for t in range(1, b + 1):
        if b % t == 0 and t <= max_tb:
            best = t
    return best


def _pick_tq(n, target=512):
    """Query-row tile: full N when small, else a divisor <= target that is %8 == 0."""
    if n <= target:
        return n
    for t in range(target, 7, -1):
        if n % t == 0 and t % 8 == 0:
            return t
    return n


def _gat_head_kernel(x_ref, w_ref, bias_ref, o_ref, h_ref, f1_ref, f2t_ref,
                     *, f_pad, tq, alpha):
    """Grid point (b, q): query-row tile q of batch block b."""
    q = pl.program_id(1)

    # ---- Projection once per batch block; result stays VMEM-resident across q. ----
    @pl.when(q == 0)
    def _():
        x = x_ref[...]                                     # (TB, N, F_in)
        tb, n, f_in = x.shape
        x_flat = x.reshape(tb * n, f_in)                   # tall M for the MXU
        # One wide MXU matmul: cols [0:F_out] = h (zero-padded to F_pad),
        # col F_pad = h@a1, col F_pad+1 = h@a2 (their own lane-aligned tile).
        h_aug = jnp.dot(x_flat, w_ref[...],
                        preferred_element_type=jnp.float32)
        h_aug = h_aug.reshape(tb, n, -1)                   # (TB, N, F_pad+128) f32
        h_ref[...] = h_aug[:, :, :f_pad].astype(h_ref.dtype)      # tile-aligned view
        f1_ref[...] = h_aug[:, :, f_pad:f_pad + 1]                 # (TB, N, 1) f32
        # f2 transposed ONCE per batch block into lane orientation.
        f2t_ref[...] = jnp.swapaxes(h_aug[:, :, f_pad + 1:f_pad + 2], 1, 2)

    # ---- Attention for the TQ query rows of this tile. ----
    row0 = pl.multiple_of(q * tq, tq)
    f1_q = f1_ref[:, pl.ds(row0, tq), :]                   # (TB, TQ, 1)

    # e_ij = leaky_relu(h_i . a1 + h_j . a2)
    e = f1_q + f2t_ref[...]                                # (TB, TQ, N) f32
    e = jnp.maximum(e, alpha * e)                          # LeakyReLU (0 < alpha < 1)

    # Additive adjacency bias (0 for edges, -9e15 otherwise), exact row softmax.
    att = e + bias_ref[...].astype(jnp.float32)
    att = att - jnp.max(att, axis=-1, keepdims=True)
    p = jnp.exp(att)
    inv = pl.reciprocal(jnp.sum(p, axis=-1, keepdims=True), approx=True)   # EUP slot

    # Un-normalized weighted sum on the MXU, then a cheap (TQ, F_pad) rescale.
    h = h_ref[...]                                         # (TB, N, F_pad) mxu dtype
    hp = jnp.einsum("bqn,bnf->bqf", p.astype(h.dtype), h,
                    preferred_element_type=jnp.float32)    # (TB, TQ, F_pad) f32
    o_ref[...] = (hp * inv).astype(o_ref.dtype)


def graph_attention_head(x, adj, W, a, *, alpha=0.2, mask=None,
                         mxu_dtype=jnp.bfloat16, out_dtype=jnp.float32,
                         tb=None, tq=None, vmem_limit_bytes=None):
    """Single GAT attention head forward (eval mode: dropout is identity).

    x    : (B, N, F_in)   node features
    adj  : (N, N)         adjacency (only `adj > 0` is used)
    W    : (F_in, F_out)  projection weight
    a    : (2*F_out, 1)   attention vector
    mask : optional (B, N, 1), multiplied into the output once (as in PyTorch)
    mxu_dtype : matmul-operand dtype (bf16 default; pass jnp.float32 for exact parity)
    returns (B, N, F_out)
    """
    B, N, F_in = x.shape
    F_out = W.shape[-1]

    F_pad = _round_up(F_out, 128)       # lane-dense h / output, full MXU N-fill
    W_cols = F_pad + 128                # a1/a2 columns live in their own lane tile

    mxu_dtype = jnp.dtype(mxu_dtype) if mxu_dtype is not None else jnp.dtype(jnp.float32)

    # Fold the attention vectors into the (padded) projection weight.
    W = W.astype(jnp.float32)
    a = a.astype(jnp.float32)
    a1, a2 = a[:F_out, :], a[F_out:, :]
    W_aug = jnp.zeros((F_in, W_cols), jnp.float32)
    W_aug = W_aug.at[:, :F_out].set(W)
    W_aug = W_aug.at[:, F_pad].set((W @ a1)[:, 0])
    W_aug = W_aug.at[:, F_pad + 1].set((W @ a2)[:, 0])
    W_aug = W_aug.astype(mxu_dtype)
    x_in = x.astype(mxu_dtype)

    # Adjacency as an additive bias in bf16 (half the DMA/VMEM of f32, no per-element
    # compare/select in the kernel).
    bias = jnp.where(adj > 0, 0.0, -9e15).astype(jnp.bfloat16)

    tb = tb or _pick_tb(B, N)
    tq = tq or _pick_tq(N)
    nb, nq = B // tb, N // tq

    if vmem_limit_bytes is None:
        mxu_b = mxu_dtype.itemsize
        out_b = jnp.dtype(out_dtype).itemsize
        est = (
            tb * N * F_in * mxu_b * (1 if nb == 1 else 2)        # x block(s)
            + F_in * W_cols * mxu_b                              # W_aug (single-buffered)
            + tq * N * 2 * (1 if nq == 1 else 2)                 # bf16 bias block(s)
            + tb * tq * F_pad * out_b * 2                        # output blocks
            + tb * N * F_pad * mxu_b                             # h scratch
            + tb * N * 128 * 4 + tb * 8 * N * 4                  # f1 / f2t (padded)
            + tb * tq * N * 4 * 4                                # e/att/p temporaries
        )
        vmem_limit_bytes = int(min(max(2 * est + (4 << 20), 32 << 20), 100 << 20))

    out = pl.pallas_call(
        partial(_gat_head_kernel, f_pad=F_pad, tq=tq, alpha=float(alpha)),
        out_shape=jax.ShapeDtypeStruct((B, N, F_pad), out_dtype),
        grid_spec=pltpu.PrefetchScalarGridSpec(
            num_scalar_prefetch=0,
            grid=(nb, nq),
            in_specs=[
                # x[b-block]: constant over q -> stays VMEM-resident across the q loop.
                pl.BlockSpec((tb, N, F_in), lambda b, q: (b, 0, 0)),
                # W_aug: constant over the whole grid -> single-buffered.
                pl.BlockSpec((F_in, W_cols), lambda b, q: (0, 0),
                             pipeline_mode=pl.Buffered(1)),
                # adjacency bias, tiled over query rows.
                pl.BlockSpec((tq, N), lambda b, q: (q, 0),
                             pipeline_mode=pl.Buffered(1) if nq == 1 else None),
            ],
            out_specs=pl.BlockSpec((tb, tq, F_pad), lambda b, q: (b, q, 0)),
            scratch_shapes=[
                pltpu.VMEM((tb, N, F_pad), mxu_dtype),    # h (MXU operand dtype)
                pltpu.VMEM((tb, N, 1), jnp.float32),      # f1 = h @ a1
                pltpu.VMEM((tb, 1, N), jnp.float32),      # f2^T = (h @ a2)^T
            ],
        ),
        compiler_params=pltpu.CompilerParams(
            dimension_semantics=("parallel", "arbitrary"),   # batch sharded on v7x; q sequential
            vmem_limit_bytes=vmem_limit_bytes),
    )(x_in, W_aug, bias)

    if F_pad != F_out:
        out = out[..., :F_out]     # consumers accepting the padded layout can skip this
    if mask is not None:
        out = out * mask           # applied exactly once, matching the PyTorch forward
    return out


def _xavier_uniform(key, shape):
    fan_in, fan_out = shape[-2], shape[-1]
    limit = jnp.sqrt(6.0 / (fan_in + fan_out))
    return jax.random.uniform(key, shape, jnp.float32, -limit, limit)


def _reference(x, adj, W, a, alpha=0.2, mask=None):
    """Pure-JAX reference mirroring the PyTorch forward (eval mode)."""
    F_out = W.shape[-1]
    h = jnp.einsum("bnf,fo->bno", x, W)                 # (B, N, F_out)
    f1 = h @ a[:F_out, 0]                               # (B, N)
    f2 = h @ a[F_out:, 0]                               # (B, N)
    e = f1[:, :, None] + f2[:, None, :]                 # (B, N, N)
    e = jnp.where(e > 0, e, alpha * e)
    att = jnp.where(adj[None] > 0, e, -9e15)
    att = jax.nn.softmax(att, axis=2)
    out = jnp.einsum("bij,bjo->bio", att, h)
    if mask is not None:
        out = out * mask
    return out


if __name__ == "__main__":
    # Small shapes consistent with the module: in_features=16, out_features=32.
    B, N, F_in, F_out = 2, 8, 16, 32
    alpha = 0.2

    key = jax.random.PRNGKey(0)
    k_x, k_adj, k_w, k_a, k_m = jax.random.split(key, 5)

    x = jax.random.normal(k_x, (B, N, F_in), jnp.float32)
    adj = (jax.random.uniform(k_adj, (N, N)) > 0.4).astype(jnp.float32)
    adj = adj.at[jnp.arange(N), jnp.arange(N)].set(1.0)  # self loops
    W = _xavier_uniform(k_w, (F_in, F_out))
    a = _xavier_uniform(k_a, (2 * F_out, 1))
    mask = (jax.random.uniform(k_m, (B, N, 1)) > 0.25).astype(jnp.float32)

    ref = _reference(x, adj, W, a, alpha=alpha)

    # f32 MXU path: tight parity with the PyTorch math.
    out_f32 = jax.block_until_ready(
        graph_attention_head(x, adj, W, a, alpha=alpha, mxu_dtype=jnp.float32))
    assert out_f32.shape == (B, N, F_out)
    assert jnp.allclose(out_f32, ref, atol=1e-2, rtol=1e-2), "f32 mismatch vs reference"

    # Default bf16 MXU path (f32 accumulation + f32 softmax math).
    out_bf16 = jax.block_until_ready(graph_attention_head(x, adj, W, a, alpha=alpha))
    assert jnp.allclose(out_bf16, ref, atol=1e-1, rtol=1e-1), "bf16 mismatch vs reference"

    # Masked path (mask applied once, as in the PyTorch module).
    out_m = jax.block_until_ready(
        graph_attention_head(x, adj, W, a, alpha=alpha, mask=mask,
                             mxu_dtype=jnp.float32))
    ref_m = _reference(x, adj, W, a, alpha=alpha, mask=mask)
    assert jnp.allclose(out_m, ref_m, atol=1e-2, rtol=1e-2), "masked mismatch vs reference"

    print("KERNEL_OK")
</pallas_src>

<mosaic_0001>
module attributes {stable_mosaic.version = 11 : i64} {
  func.func @_gat_head_kernel(%arg0: i32, %arg1: i32, %arg2: memref<2x8x16xf32, #tpu.memory_space<vmem>>, %arg3: memref<16x256xf32, #tpu.memory_space<vmem>>, %arg4: memref<8x8xbf16, #tpu.memory_space<vmem>>, %arg5: memref<2x8x128xf32, #tpu.memory_space<vmem>>, %arg6: memref<2x8x128xf32, #tpu.memory_space<vmem>>, %arg7: memref<2x8x1xf32, #tpu.memory_space<vmem>>, %arg8: memref<2x1x8xf32, #tpu.memory_space<vmem>>) attributes {dimension_semantics = [#tpu.dimension_semantics<parallel>, #tpu.dimension_semantics<arbitrary>], iteration_bounds = array<i64: 1, 1>, scalar_prefetch = 0 : i64, scratch_operands = 3 : i64, tpu.core_type = #tpu.core_type<tc>, window_params = [{transform_indices = @transform_0, window_bounds = array<i64: 2, 8, 16>}, {pipeline_mode = #tpu.pipeline_mode<synchronous>, transform_indices = @transform_1, window_bounds = array<i64: 16, 256>}, {pipeline_mode = #tpu.pipeline_mode<synchronous>, transform_indices = @transform_2, window_bounds = array<i64: 8, 8>}, {transform_indices = @transform_3, window_bounds = array<i64: 2, 8, 128>}]} {
    %c0_i32 = arith.constant 0 : i32
    %0 = arith.cmpi eq, %arg1, %c0_i32 : i32
    %1 = arith.extui %0 : i1 to i32
    %c0_i32_0 = arith.constant 0 : i32
    %2 = arith.cmpi ne, %1, %c0_i32_0 : i32
    scf.if %2 {
      %c0_16 = arith.constant 0 : index
      %c0_17 = arith.constant 0 : index
      %c0_18 = arith.constant 0 : index
      %32 = vector.load %arg2[%c0_16, %c0_17, %c0_18] : memref<2x8x16xf32, #tpu.memory_space<vmem>>, vector<2x8x16xf32>
      %33 = vector.shape_cast %32 : vector<2x8x16xf32> to vector<16x16xf32>
      %c0_19 = arith.constant 0 : index
      %c0_20 = arith.constant 0 : index
      %34 = vector.load %arg3[%c0_19, %c0_20] : memref<16x256xf32, #tpu.memory_space<vmem>>, vector<16x256xf32>
      %cst_21 = arith.constant dense<0.000000e+00> : vector<16x256xf32>
      %35 = tpu.matmul %33, %34, %cst_21 {dimension_numbers = #tpu.dot_dimension_numbers<[1], [0], [0], [1], [0, 0, 1, 1], [], []>} : vector<16x16xf32>, vector<16x256xf32>, vector<16x256xf32> -> vector<16x256xf32>
      %36 = vector.shape_cast %35 : vector<16x256xf32> to vector<2x8x256xf32>
      %37 = vector.extract_strided_slice %36 {offsets = [0, 0, 0], sizes = [2, 8, 128], strides = [1, 1, 1]} : vector<2x8x256xf32> to vector<2x8x128xf32>
      %c0_22 = arith.constant 0 : index
      %c0_23 = arith.constant 0 : index
      %c0_24 = arith.constant 0 : index
      %38 = vector.load %arg6[%c0_22, %c0_23, %c0_24] : memref<2x8x128xf32, #tpu.memory_space<vmem>>, vector<2x8x128xf32>
      tpu.vector_store %arg6[%c0_22, %c0_23, %c0_24], %37 {strides = array<i32>} : memref<2x8x128xf32, #tpu.memory_space<vmem>>, vector<2x8x128xf32>,
      %39 = vector.extract_strided_slice %36 {offsets = [0, 0, 128], sizes = [2, 8, 1], strides = [1, 1, 1]} : vector<2x8x256xf32> to vector<2x8x1xf32>
      %c0_25 = arith.constant 0 : index
      %c0_26 = arith.constant 0 : index
      %c0_27 = arith.constant 0 : index
      %40 = vector.load %arg7[%c0_25, %c0_26, %c0_27] : memref<2x8x1xf32, #tpu.memory_space<vmem>>, vector<2x8x1xf32>
      tpu.vector_store %arg7[%c0_25, %c0_26, %c0_27], %39 {strides = array<i32>} : memref<2x8x1xf32, #tpu.memory_space<vmem>>, vector<2x8x1xf32>,
      %41 = vector.extract_strided_slice %36 {offsets = [0, 0, 129], sizes = [2, 8, 1], strides = [1, 1, 1]} : vector<2x8x256xf32> to vector<2x8x1xf32>
      %42 = tpu.transpose %41, [0, 2, 1] : vector<2x8x1xf32> -> vector<2x1x8xf32>
      %c0_28 = arith.constant 0 : index
      %c0_29 = arith.constant 0 : index
      %c0_30 = arith.constant 0 : index
      %43 = vector.load %arg8[%c0_28, %c0_29, %c0_30] : memref<2x1x8xf32, #tpu.memory_space<vmem>>, vector<2x1x8xf32>
      tpu.vector_store %arg8[%c0_28, %c0_29, %c0_30], %42 {strides = array<i32>} : memref<2x1x8xf32, #tpu.memory_space<vmem>>, vector<2x1x8xf32>,
    } else {
    }
    %c8_i32 = arith.constant 8 : i32
    %3 = arith.muli %arg1, %c8_i32 : i32
    %4 = tpu.assume_multiple %3, 8 : i32
    %c0 = arith.constant 0 : index
    %5 = arith.index_cast %4 : i32 to index
    %c0_1 = arith.constant 0 : index
    %6 = vector.load %arg7[%c0, %5, %c0_1] : memref<2x8x1xf32, #tpu.memory_space<vmem>>, vector<2x8x1xf32>
    %c0_2 = arith.constant 0 : index
    %c0_3 = arith.constant 0 : index
    %c0_4 = arith.constant 0 : index
    %7 = vector.load %arg8[%c0_2, %c0_3, %c0_4] : memref<2x1x8xf32, #tpu.memory_space<vmem>>, vector<2x1x8xf32>
    %8 = vector.broadcast %6 : vector<2x8x1xf32> to vector<2x8x8xf32>
    %9 = vector.broadcast %7 : vector<2x1x8xf32> to vector<2x8x8xf32>
    %10 = arith.addf %8, %9 : vector<2x8x8xf32>
    %cst = arith.constant 2.000000e-01 : f32
    %11 = vector.broadcast %cst : f32 to vector<2x8x8xf32>
    %12 = arith.mulf %11, %10 : vector<2x8x8xf32>
    %13 = arith.maximumf %10, %12 : vector<2x8x8xf32>
    %c0_5 = arith.constant 0 : index
    %c0_6 = arith.constant 0 : index
    %14 = vector.load %arg4[%c0_5, %c0_6] : memref<8x8xbf16, #tpu.memory_space<vmem>>, vector<8x8xbf16>
    %15 = arith.extf %14 : vector<8x8xbf16> to vector<8x8xf32>
    %16 = vector.shape_cast %15 : vector<8x8xf32> to vector<1x8x8xf32>
    %17 = vector.broadcast %16 : vector<1x8x8xf32> to vector<2x8x8xf32>
    %18 = arith.addf %13, %17 : vector<2x8x8xf32>
    %cst_7 = arith.constant dense<0xFF800000> : vector<2x8xf32>
    %19 = vector.multi_reduction <maximumf>, %18, %cst_7 [2] : vector<2x8x8xf32> to vector<2x8xf32>
    %20 = vector.shape_cast %19 : vector<2x8xf32> to vector<2x8x1xf32>
    %21 = vector.broadcast %20 : vector<2x8x1xf32> to vector<2x8x8xf32>
    %22 = arith.subf %18, %21 : vector<2x8x8xf32>
    %23 = math.exp %22 : vector<2x8x8xf32>
    %cst_8 = arith.constant dense<0.000000e+00> : vector<2x8xf32>
    %24 = vector.multi_reduction <add>, %23, %cst_8 [2] : vector<2x8x8xf32> to vector<2x8xf32>
    %25 = vector.shape_cast %24 : vector<2x8xf32> to vector<2x8x1xf32>
    %26 = tpu.reciprocal %25 {approx = true} : vector<2x8x1xf32> -> vector<2x8x1xf32>
    %c0_9 = arith.constant 0 : index
    %c0_10 = arith.constant 0 : index
    %c0_11 = arith.constant 0 : index
    %27 = vector.load %arg6[%c0_9, %c0_10, %c0_11] : memref<2x8x128xf32, #tpu.memory_space<vmem>>, vector<2x8x128xf32>
    "tpu.trace_start"() <{level = 10 : i32, message = "bqn,bnf->bqf"}> : () -> ()
    %cst_12 = arith.constant dense<0.000000e+00> : vector<2x8x128xf32>
    %28 = tpu.matmul %23, %27, %cst_12 {dimension_numbers = #tpu.dot_dimension_numbers<[2], [1], [1], [2], [0, 0, 0, 1, 1, 2], [0], [0]>} : vector<2x8x8xf32>, vector<2x8x128xf32>, vector<2x8x128xf32> -> vector<2x8x128xf32>
    "tpu.trace_stop"() : () -> ()
    %29 = vector.broadcast %26 : vector<2x8x1xf32> to vector<2x8x128xf32>
    %30 = arith.mulf %28, %29 : vector<2x8x128xf32>
    %c0_13 = arith.constant 0 : index
    %c0_14 = arith.constant 0 : index
    %c0_15 = arith.constant 0 : index
    %31 = vector.load %arg5[%c0_13, %c0_14, %c0_15] : memref<2x8x128xf32, #tpu.memory_space<vmem>>, vector<2x8x128xf32>
    tpu.vector_store %arg5[%c0_13, %c0_14, %c0_15], %30 {strides = array<i32>} : memref<2x8x128xf32, #tpu.memory_space<vmem>>, vector<2x8x128xf32>,
    return
  }
  func.func @transform_0(%arg0: i32, %arg1: i32) -> (i32, i32, i32) {
    %c0_i32 = arith.constant 0 : i32
    %c0_i32_0 = arith.constant 0 : i32
    %c0_i32_1 = arith.constant 0 : i32
    return %arg0, %c0_i32, %c0_i32_0 : i32, i32, i32
  }
  func.func @transform_1(%arg0: i32, %arg1: i32) -> (i32, i32) {
    %c0_i32 = arith.constant 0 : i32
    %c0_i32_0 = arith.constant 0 : i32
    %c0_i32_1 = arith.constant 0 : i32
    return %c0_i32, %c0_i32_0 : i32, i32
  }
  func.func @transform_2(%arg0: i32, %arg1: i32) -> (i32, i32) {
    %c0_i32 = arith.constant 0 : i32
    %c0_i32_0 = arith.constant 0 : i32
    return %arg1, %c0_i32 : i32, i32
  }
  func.func @transform_3(%arg0: i32, %arg1: i32) -> (i32, i32, i32) {
    %c0_i32 = arith.constant 0 : i32
    %c0_i32_0 = arith.constant 0 : i32
    return %arg0, %arg1, %c0_i32 : i32, i32, i32
  }
}

</mosaic_0001>

<bundles_post_ra>
// kernel: tpu_custom_call.1
= control target key start
LH: loop header
LB: loop body
LE: loop exit
PB: predicated region body
PF: predicated region fallthrough
CT: control target
= control target key end

     0   :  { %8 = vsyncpa [#allocation6], 0  ;;  %s517_s0 = inlined_call_operand.hbm [shape: f32[2,8,16], index: 0, kind: input, shape index: {}]   ;;  %s518_s1 = inlined_call_operand.hbm [shape: f32[16,256], index: 1, kind: input, shape index: {}]   ;;  %s519_s2 = inlined_call_operand.hbm [shape: bf16[8,8], index: 2, kind: input, shape index: {}]   ;;  %s520_s3 = inlined_call_operand.hbm [shape: f32[2,8,128], index: 3, kind: output, shape index: {}]  }
   0x1   :  { %9 = vsyncpa [#allocation9], 0  ;;  %s28_s14 = sshll.u32 %s518_s1, 4  ;;  %s29_s14 = int_to_ptr.hbm [resolvable:$true] %s28_s14 }
   0x2   :  { %10 = vsyncpa [#allocation7], 0  ;;  %s459_s15 = smov [#allocation8]   ;;  %s15_s19 = sshll.u32 %s517_s0, 4  ;;  %s16_s19 = int_to_ptr.hbm [resolvable:$true] %s15_s19 }
   0x3   :  { %s30_s16 = sshll.u32 %s459_s15, 4  ;;  %s460_s20 = smov 256   ;;  %s31_s16 = int_to_ptr.vmem [resolvable:$true] %s30_s16 }
   0x4   :  { %s461_s21 = smov 16   ;;  %s462_s22 = smov [#allocation5]  }
   0x5   :  { %36 = dma.hbm_to_vmem [thread:$0]  %s29_s14, 512, %s31_s16, [#allocation9], %s460_s20, %s460_s20, %s461_s21  }
   0x6   :  { %s17_s23 = sshll.u32 %s462_s22, 4  ;;  %s463_s24 = smov 128   ;;  %s18_s23 = int_to_ptr.vmem [resolvable:$true] %s17_s23 }
   0x7   :  { %s464_s25 = smov 8   ;;  %s42_s27 = sshll.u32 %s519_s2, 4  ;;  %s43_s27 = int_to_ptr.hbm [resolvable:$true] %s42_s27 }
   0x8   :  { %23 = dma.hbm_to_vmem [thread:$0]  %s16_s19, 256, %s18_s23, [#allocation6], %s463_s24, %s463_s24, %s464_s25  }
   0x9   :  { %s465_s28 = smov [#allocation10]  }
   0xa   :  { %s44_s0 = sshll.u32 %s465_s28, 4  ;;  %s45_s0 = int_to_ptr.vmem [resolvable:$true] %s44_s0 }
   0xb   :  { %47 = dma.hbm_to_vmem [thread:$0]  %s43_s27, 64, %s45_s0, [#allocation9]  }
   0xc   :  { %453 = dma.done.wait [#allocation6], 256  }
   0xd   :  { %454 = vsyncadd [#allocation6], 4294967040 }
   0xe   :  { %455 = dma.done.wait [#allocation9], 576  }
   0xf   :  { %456 = vsyncadd [#allocation9], 4294966720  ;;  %v69_v0 = vld [vmem:[#allocation8 + $0x18] sm:$0xff]  ;;  %v67_v1 = vld [vmem:[#allocation8 + $0x8] sm:$0xff]  ;;  %vm70_vm0 = vcmask 130048   ;;  %v466_v4 = vmov 0  }
  0x10   :  { %114 = vmatpush.msra.mxu1 %v69_v0  ;;  %v64_v2 = vld [vmem:[#allocation5] sm:$0xff]  ;;  %v65_v3 = vld [vmem:[#allocation5 + $0x8] sm:$0xff]  ;;  %345 = vset.pattern.permute.xlu1 %v466_v4  ;;  %vm125_vm1 = vcmask 7168   ;;  %s467_s2 = smov 127   ;;  %v66_v12 = vld [vmem:[#allocation8] sm:$0xff]  ;;  %vm200_vm2 = vcmask 57344  }
  0x11   :  { %346 = vset.pattern.permute.xlu0 %v466_v4  ;;  %v68_v11 = vld [vmem:[#allocation8 + $0x10] sm:$0xff]  ;;  %v231_v17 = vld [vmem:[#allocation10] sm:$0xf]  ;;  %vm235_vm3 = vcmask 64512   ;;  %s468_s29 = smov [#allocation11]   ;;  %s314_s6 = sshll.u32 %s520_s3, 4  ;;  %s315_s6 = int_to_ptr.hbm [resolvable:$true] %s314_s6 }
  0x12   :  { %115 = vmatpush.msra.mxu1 %v67_v1  ;;  %91 = vmatpush.msra.mxu0 %v68_v11  ;;  %v232_v20 = vunpack.c.l.bf16 %v231_v17  ;;  %s312_s30 = sshll.u32 %s468_s29, 4  ;;  %s313_s30 = int_to_ptr.vmem [resolvable:$true] %s312_s30 }
  0x13   :  { %330 = vmatmul.msk.f32.vlgmr.msra.gmra.mxu1 %vm70_vm0, %v64_v2 }
  0x14   :  { %92 = vmatpush.msra.mxu0 %v66_v12 }
  0x15   :  { %328 = vmatmul.msk.f32.vlgmr.msra.gmra.mxu0 %vm70_vm0, %v64_v2 }
  0x1b   :  { %331 = vmatmul.msk.f32.gmra.mxu1 %vm70_vm0, %v65_v3 }
  0x1d   :  { %329 = vmatmul.msk.f32.gmra.mxu0 %vm70_vm0, %v65_v3 }
  0x90   :  { %v117_v5 = vpop.f32.mrf.mxu1 }
  0x91   :  { %126 = vst.msk [vmem:[#allocation3] sm:$0xff] %vm125_vm1, %v117_v5  ;;  %130 = vrot.lane.b32.xlu0 %v117_v5, %s467_s2 }
  0x92   :  { %v94_v31 = vpop.f32.mrf.mxu0 }
  0x93   :  { %276 = vmatpush.msra.mxu2 %v94_v31 }
  0x98   :  { %v120_v6 = vpop.f32.mrf.mxu1  ;;  %v205_v7 = vld [vmem:[#allocation3] sm:$0xff] }
  0x99   :  { %127 = vst.msk [vmem:[#allocation3 + $0x8] sm:$0xff] %vm125_vm1, %v120_v6  ;;  %211 = vperm.xlu1 %345, %v205_v7   ;;  %132 = vrot.lane.b32.xlu0 %v120_v6, %s467_s2 }
  0x9a   :  { %v97_v32 = vpop.f32.mrf.mxu0 }
  0x9b   :  { %299 = vmatpush.msra.mxu3 %v97_v32 }
  0xa0   :  { %v206_v8 = vld [vmem:[#allocation3 + $0x8] sm:$0xff] }
  0xa1   :  { %216 = vperm.xlu1 %345, %v206_v8  }
 0x103   :  { %v131_v9 = vpop.permute.xlu0 %130 }
 0x104   :  { %136 = vxpose.xlu2.b32.start.end [1/1] (short) (narrow) %v131_v9, 8 }
 0x10b   :  { %v133_v10 = vpop.permute.xlu0 %132  ;;  %v212_v14 = vpop.permute.xlu1 %211 }
 0x10c   :  { %168 = vxpose.xlu2.b32.start.end [1/1] (short) (narrow) %v133_v10, 8 }
 0x113   :  { %v217_v24 = vpop.permute.xlu1 %216 }
 0x19d   :  { %v152_v13 = vpop.trf.xlu2 }
 0x19e   :  { %201 = vst.msk [vmem:[#allocation4] sm:$0x1] %vm200_vm2, %v152_v13 }
 0x1a5   :  { %v184_v15 = vpop.trf.xlu2  ;;  %v347_v16 = vld [vmem:[#allocation4] ss:$0 sm:$0xff] }
 0x1a6   :  { %202 = vst.msk [vmem:[#allocation4 + $0x1] sm:$0x1] %vm200_vm2, %v184_v15  ;;  %v225_v18 = vadd.f32 %v347_v16, %v212_v14 }
 0x1a8   :  { %v227_v19 = vmul.f32 0.2, %v225_v18 }
 0x1aa   :  { %v229_v21 = vmax.f32 %v225_v18, %v227_v19 }
 0x1ac   :  { %v233_v22 = vadd.f32 %v232_v20, %v229_v21 }
 0x1ad   :  { %v348_v23 = vld [vmem:[#allocation4 + $0x1] ss:$0 sm:$0xff] }
 0x1ae   :  { %v236_v25 = vsel %vm235_vm3, %v233_v22, -inf  ;;  %v226_v26 = vadd.f32 %v348_v23, %v217_v24 }
 0x1af   :  { %237 = vmax.xlane.f32.xlu0 %v236_v25 }
 0x1b0   :  { %v228_v27 = vmul.f32 0.2, %v226_v26 }
 0x1b2   :  { %v230_v28 = vmax.f32 %v226_v26, %v228_v27 }
 0x1b4   :  { %v234_v29 = vadd.f32 %v232_v20, %v230_v28 }
 0x1b6   :  { %v239_v30 = vsel %vm235_vm3, %v234_v29, -inf }
 0x1b7   :  { %240 = vmax.xlane.f32.xlu1 %v239_v30 }
 0x222   :  { %v238_v33 = vpop.xlane.xlu0 %237 }
 0x223   :  { %v242_v34 = vsub.f32 %v233_v22, %v238_v33 }
 0x225   :  { %v244_v35 = vmul.f32 1.442695, %v242_v34 }
 0x227   :  { %349 = vpow2.f32 %v244_v35 }
 0x22a   :  { %v241_v36 = vpop.xlane.xlu1 %240 }
 0x22b   :  { %v243_v37 = vsub.f32 %v234_v29, %v241_v36 }
 0x22d   :  { %v350_v38 = vpop.eup %349  ;;  %v246_v39 = vmul.f32 1.442695, %v243_v37 }
 0x22e   :  { %332 = vmatmul.msk.f32.vlgmr.msra.gmra.mxu2 %vm235_vm3, %v350_v38  ;;  %v248_v40 = vsel %vm235_vm3, %v350_v38, 0.0 }
 0x22f   :  { %351 = vpow2.f32 %v246_v39  ;;  %249 = vadd.xlane.f32.xlu2 %v248_v40 }
 0x235   :  { %v352_v41 = vpop.eup %351 }
 0x236   :  { %333 = vmatmul.msk.f32.vlgmr.msra.gmra.mxu3 %vm235_vm3, %v352_v41  ;;  %v251_v42 = vsel %vm235_vm3, %v352_v41, 0.0 }
 0x237   :  { %252 = vadd.xlane.f32.xlu0 %v251_v42 }
 0x2a2   :  { %v250_v43 = vpop.xlane.xlu2 %249 }
 0x2a3   :  { %353 = vrcp.f32 %v250_v43 }
 0x2a9   :  { %v354_v45 = vpop.eup %353 }
 0x2aa   :  { %v253_v44 = vpop.xlane.xlu0 %252 }
 0x2ab   :  { %355 = vrcp.f32 %v253_v44 }
 0x2b1   :  { %v278_v46 = vpop.f32.mrf.mxu2  ;;  %v356_v48 = vpop.eup %355 }
 0x2b2   :  { %v304_v47 = vmul.f32 %v354_v45, %v278_v46 }
 0x2b4   :  { %306 = vst [vmem:[#allocation11] sm:$0xff] %v304_v47 }
 0x2b9   :  { %v301_v49 = vpop.f32.mrf.mxu3 }
 0x2ba   :  { %v305_v50 = vmul.f32 %v356_v48, %v301_v49 }
 0x2bc   :  { %307 = vst [vmem:[#allocation11 + $0x8] sm:$0xff] %v305_v50 }
 0x2bd   :  { %320 = dma.vmem_to_hbm [thread:$0]  %s313_s30, 256, %s315_s6, [#allocation7], %s463_s24, %s463_s24, %s464_s25  }
 0x2be   :  { %457 = dma.done.wait [#allocation7], 256  }
 0x2bf   :  { %458 = vsyncadd [#allocation7], 4294967040 }
 0x2c0   :  { %325 = vsyncpa [#allocation6], 1 }
 0x2c1   :  { %326 = vsyncpa [#allocation9], 1 }
 0x2c2   :  { %327 = vsyncpa [#allocation7], 1 }

</bundles_post_ra>
